<compile_context>
chip_gen: v5e
topology: v5e:2x2
jax: 0.10.0
libtpu: 0.0.40
codegen_flags: <defaults>
</compile_context>

<pallas_src>
import functools

import jax
import jax.numpy as jnp
from jax.experimental import pallas as pl
from jax.experimental.pallas import tpu as pltpu


def _layernorm_kernel(eps, n, x_ref, g_ref, b_ref, o_ref):
    # x_ref block: (TB, N); g_ref / b_ref: (1, N), broadcast over the TB rows.
    x = x_ref[...].astype(jnp.float32)
    inv_n = jnp.float32(1.0 / n)
    s1 = jnp.sum(x, axis=-1, keepdims=True)        # per-row sum
    s2 = jnp.sum(x * x, axis=-1, keepdims=True)    # per-row sum of squares (fused pass)
    mean = s1 * inv_n
    var = jnp.maximum(s2 * inv_n - mean * mean, 0.0) + eps   # biased var + eps
    inv_std = jax.lax.rsqrt(var)
    y = (x - mean) * inv_std
    # gamma/beta already f32 (pre-cast once in the wrapper); single store per block.
    o_ref[...] = (y * g_ref[...] + b_ref[...]).astype(o_ref.dtype)


def _pick_block_rows(batch, n, itemsize, target_bytes=2 * 1024 * 1024):
    """Rows per grid step: ~2 MiB of x per buffer, multiple of 8 (sublane tile)."""
    rows = max(1, target_bytes // max(1, n * itemsize))
    if rows >= batch or batch < 8:
        return batch                      # full-extent block (always legal)
    return min(max(8, (rows // 8) * 8), (batch // 8) * 8)


def layer_norm(x, gamma, beta, eps=1e-5, block_rows=None):
    """LayerNorm over the last two dims of x:[B, L, C]; affine params (L, C)."""
    B, L, C = x.shape
    N = L * C

    # Lane-dense layout: normalize over the flat last axis of size N.
    xf = x.reshape(B, N)
    g = gamma.reshape(1, N).astype(jnp.float32)   # hoisted cast (once, not per step)
    b = beta.reshape(1, N).astype(jnp.float32)

    if block_rows is None:
        block_rows = _pick_block_rows(B, N, jnp.dtype(x.dtype).itemsize)
    TB = block_rows
    grid = (pl.cdiv(B, TB),)

    kernel = functools.partial(_layernorm_kernel, float(eps), N)

    out = pl.pallas_call(
        kernel,
        out_shape=jax.ShapeDtypeStruct((B, N), x.dtype),
        grid_spec=pltpu.PrefetchScalarGridSpec(
            num_scalar_prefetch=0,
            grid=grid,
            in_specs=[
                pl.BlockSpec((TB, N), lambda i: (i, 0)),   # streaming x rows
                pl.BlockSpec((1, N), lambda i: (0, 0)),    # gamma (constant block index)
                pl.BlockSpec((1, N), lambda i: (0, 0)),    # beta  (constant block index)
            ],
            out_specs=pl.BlockSpec((TB, N), lambda i: (i, 0)),
        ),
        compiler_params=pltpu.CompilerParams(
            dimension_semantics=("parallel",),             # batch-row axis is independent
        ),
    )(xf, g, b)
    return out.reshape(B, L, C)


def layer_norm_ref(x, gamma, beta, eps=1e-5):
    """Pure-JAX reference mirroring the PyTorch forward exactly."""
    xf = x.astype(jnp.float32)
    mean = jnp.mean(xf, axis=(-2, -1), keepdims=True)
    var = jnp.mean((xf - mean) ** 2, axis=(-2, -1), keepdims=True) + eps
    return ((xf - mean) / jnp.sqrt(var) * gamma + beta).astype(x.dtype)


if __name__ == "__main__":
    key = jax.random.PRNGKey(0)
    B, L, C = 2, 8, 32

    x = jax.random.normal(key, (B, L, C), dtype=jnp.float32)

    # Deterministic parameter init, matching LayerNorm.initial_y_b:
    # _y = ones((L, C)), _b = zeros((L, C))
    gamma = jnp.ones((L, C), dtype=jnp.float32)
    beta = jnp.zeros((L, C), dtype=jnp.float32)

    out = layer_norm(x, gamma, beta, eps=1e-5)
    out = jax.block_until_ready(out)

    ref = layer_norm_ref(x, gamma, beta, eps=1e-5)
    assert out.shape == (B, L, C)
    assert jnp.allclose(out, ref, atol=2e-5, rtol=2e-5), "mismatch vs reference"

    print("KERNEL_OK")
</pallas_src>

<mosaic_0001>
module attributes {stable_mosaic.version = 11 : i64} {
  func.func @_layernorm_kernel(%arg0: i32, %arg1: memref<2x256xf32, #tpu.memory_space<vmem>>, %arg2: memref<1x256xf32, #tpu.memory_space<vmem>>, %arg3: memref<1x256xf32, #tpu.memory_space<vmem>>, %arg4: memref<2x256xf32, #tpu.memory_space<vmem>>) attributes {dimension_semantics = [#tpu.dimension_semantics<parallel>], iteration_bounds = array<i64: 1>, scalar_prefetch = 0 : i64, scratch_operands = 0 : i64, tpu.core_type = #tpu.core_type<tc>, window_params = [{transform_indices = @transform_0, window_bounds = array<i64: 2, 256>}, {pipeline_mode = #tpu.pipeline_mode<synchronous>, transform_indices = @transform_1, window_bounds = array<i64: 1, 256>}, {pipeline_mode = #tpu.pipeline_mode<synchronous>, transform_indices = @transform_2, window_bounds = array<i64: 1, 256>}, {transform_indices = @transform_3, window_bounds = array<i64: 2, 256>}]} {
    %c0 = arith.constant 0 : index
    %c0_0 = arith.constant 0 : index
    %0 = vector.load %arg1[%c0, %c0_0] : memref<2x256xf32, #tpu.memory_space<vmem>>, vector<2x256xf32>
    %cst = arith.constant dense<0.000000e+00> : vector<2xf32>
    %1 = vector.multi_reduction <add>, %0, %cst [1] : vector<2x256xf32> to vector<2xf32>
    %2 = vector.shape_cast %1 : vector<2xf32> to vector<2x1xf32>
    %3 = arith.mulf %0, %0 : vector<2x256xf32>
    %cst_1 = arith.constant dense<0.000000e+00> : vector<2xf32>
    %4 = vector.multi_reduction <add>, %3, %cst_1 [1] : vector<2x256xf32> to vector<2xf32>
    %5 = vector.shape_cast %4 : vector<2xf32> to vector<2x1xf32>
    %cst_2 = arith.constant 3.906250e-03 : f32
    %6 = vector.broadcast %cst_2 : f32 to vector<2x1xf32>
    %7 = arith.mulf %2, %6 : vector<2x1xf32>
    %cst_3 = arith.constant 3.906250e-03 : f32
    %8 = vector.broadcast %cst_3 : f32 to vector<2x1xf32>
    %9 = arith.mulf %5, %8 : vector<2x1xf32>
    %10 = arith.mulf %7, %7 : vector<2x1xf32>
    %11 = arith.subf %9, %10 : vector<2x1xf32>
    %cst_4 = arith.constant 0.000000e+00 : f32
    %12 = vector.broadcast %cst_4 : f32 to vector<2x1xf32>
    %13 = arith.maximumf %11, %12 : vector<2x1xf32>
    %cst_5 = arith.constant 9.99999974E-6 : f32
    %14 = vector.broadcast %cst_5 : f32 to vector<2x1xf32>
    %15 = arith.addf %13, %14 : vector<2x1xf32>
    %16 = math.rsqrt %15 : vector<2x1xf32>
    %17 = vector.broadcast %7 : vector<2x1xf32> to vector<2x256xf32>
    %18 = arith.subf %0, %17 : vector<2x256xf32>
    %19 = vector.broadcast %16 : vector<2x1xf32> to vector<2x256xf32>
    %20 = arith.mulf %18, %19 : vector<2x256xf32>
    %c0_6 = arith.constant 0 : index
    %c0_7 = arith.constant 0 : index
    %21 = vector.load %arg2[%c0_6, %c0_7] : memref<1x256xf32, #tpu.memory_space<vmem>>, vector<1x256xf32>
    %22 = vector.broadcast %21 : vector<1x256xf32> to vector<2x256xf32>
    %23 = arith.mulf %20, %22 : vector<2x256xf32>
    %c0_8 = arith.constant 0 : index
    %c0_9 = arith.constant 0 : index
    %24 = vector.load %arg3[%c0_8, %c0_9] : memref<1x256xf32, #tpu.memory_space<vmem>>, vector<1x256xf32>
    %25 = vector.broadcast %24 : vector<1x256xf32> to vector<2x256xf32>
    %26 = arith.addf %23, %25 : vector<2x256xf32>
    %c0_10 = arith.constant 0 : index
    %c0_11 = arith.constant 0 : index
    %27 = vector.load %arg4[%c0_10, %c0_11] : memref<2x256xf32, #tpu.memory_space<vmem>>, vector<2x256xf32>
    tpu.vector_store %arg4[%c0_10, %c0_11], %26 {strides = array<i32>} : memref<2x256xf32, #tpu.memory_space<vmem>>, vector<2x256xf32>,
    return
  }
  func.func @transform_0(%arg0: i32) -> (i32, i32) {
    %c0_i32 = arith.constant 0 : i32
    %c0_i32_0 = arith.constant 0 : i32
    return %arg0, %c0_i32 : i32, i32
  }
  func.func @transform_1(%arg0: i32) -> (i32, i32) {
    %c0_i32 = arith.constant 0 : i32
    %c0_i32_0 = arith.constant 0 : i32
    %c0_i32_1 = arith.constant 0 : i32
    return %c0_i32, %c0_i32_0 : i32, i32
  }
  func.func @transform_2(%arg0: i32) -> (i32, i32) {
    %c0_i32 = arith.constant 0 : i32
    %c0_i32_0 = arith.constant 0 : i32
    %c0_i32_1 = arith.constant 0 : i32
    return %c0_i32, %c0_i32_0 : i32, i32
  }
  func.func @transform_3(%arg0: i32) -> (i32, i32) {
    %c0_i32 = arith.constant 0 : i32
    %c0_i32_0 = arith.constant 0 : i32
    return %arg0, %c0_i32 : i32, i32
  }
}

</mosaic_0001>

<bundles_post_ra>
// kernel: tpu_custom_call.1
= control target key start
LH: loop header
LB: loop body
LE: loop exit
PB: predicated region body
PF: predicated region fallthrough
CT: control target
= control target key end

     0   :  { %8 = vsyncpa [#allocation3], 0  ;;  %s298_s0 = inlined_call_operand.hbm [shape: f32[2,256], index: 0, kind: input, shape index: {}]   ;;  %s299_s1 = inlined_call_operand.hbm [shape: f32[1,256], index: 1, kind: input, shape index: {}]   ;;  %s300_s2 = inlined_call_operand.hbm [shape: f32[1,256], index: 2, kind: input, shape index: {}]   ;;  %s301_s3 = inlined_call_operand.hbm [shape: f32[2,256], index: 3, kind: output, shape index: {}]  }
   0x1   :  { %9 = vsyncpa [#allocation6], 0  ;;  %s27_s14 = sshll.u32 %s299_s1, 4  ;;  %s28_s14 = int_to_ptr.hbm [resolvable:$true] %s27_s14 }
   0x2   :  { %10 = vsyncpa [#allocation4], 0  ;;  %s255_s15 = smov [#allocation5]   ;;  %s16_s19 = sshll.u32 %s298_s0, 4  ;;  %s17_s19 = int_to_ptr.hbm [resolvable:$true] %s16_s19 }
   0x3   :  { %s29_s16 = sshll.u32 %s255_s15, 4  ;;  %s256_s20 = smov [#allocation2]   ;;  %s30_s16 = int_to_ptr.vmem [resolvable:$true] %s29_s16 }
   0x4   :  { %32 = dma.hbm_to_vmem [thread:$0]  %s28_s14, 32, %s30_s16, [#allocation6]  }
   0x5   :  { %s18_s21 = sshll.u32 %s256_s20, 4  ;;  %s38_s24 = sshll.u32 %s300_s2, 4  ;;  %s19_s21 = int_to_ptr.vmem [resolvable:$true] %s18_s21  ;;  %s39_s24 = int_to_ptr.hbm [resolvable:$true] %s38_s24 }
   0x6   :  { %21 = dma.hbm_to_vmem [thread:$0]  %s17_s19, 64, %s19_s21, [#allocation3]  }
   0x7   :  { %s257_s1 = smov [#allocation7]  }
   0x8   :  { %s40_s25 = sshll.u32 %s257_s1, 4  ;;  %s41_s25 = int_to_ptr.vmem [resolvable:$true] %s40_s25 }
   0x9   :  { %43 = dma.hbm_to_vmem [thread:$0]  %s39_s24, 32, %s41_s25, [#allocation6]  }
   0xa   :  { %249 = dma.done.wait [#allocation3], 64  }
   0xb   :  { %250 = vsyncadd [#allocation3], 4294967232 }
   0xc   :  { %251 = dma.done.wait [#allocation6], 64  }
   0xd   :  { %252 = vsyncadd [#allocation6], 4294967232  ;;  %v56_v0 = vld [vmem:[#allocation2] sm:$0xf]  ;;  %vm63_vm0 = vcmask 1041408   ;;  %s259_s0 = smov [#allocation8]  }
   0xe   :  { %58 = vst [vmem:[#allocation1] ss:$4 sm:$0xff] %v56_v0  ;;  %v69_v1 = vmul.f32 %v56_v0, %v56_v0  ;;  %v258_v21 = vmov 269488144   ;;  %v111_v24 = vld [vmem:[#allocation5] sm:$0x3] }
   0xf   :  { %v99_v22 = vunpack.c.l.s4 %v258_v21  ;;  %v119_v27 = vld [vmem:[#allocation7] sm:$0x3]  ;;  %v114_v29 = vperm.slane %v111_v24, 1  ;;  %v113_v34 = vperm.slane %v111_v24, 0  ;;  %s133_s2 = sshll.u32 %s259_s0, 4  ;;  %s135_s28 = sshll.u32 %s301_s3, 4  ;;  %s134_s2 = int_to_ptr.vmem [resolvable:$true] %s133_s2  ;;  %s136_s28 = int_to_ptr.hbm [resolvable:$true] %s135_s28 }
  0x10   :  { %v122_v31 = vperm.slane %v119_v27, 1  ;;  %v121_v37 = vperm.slane %v119_v27, 0 }
  0x11   :  { %v100_v26 = vunpack.c.0.s8 %v99_v22  ;;  %v115_v35 = vrot.slane %v114_v29, 6 }
  0x12   :  { %v123_v38 = vrot.slane %v122_v31, 6 }
  0x13   :  { %v116_v41 = vsel %vm63_vm0, %v113_v34, %v115_v35 }
  0x14   :  { %v124_v43 = vsel %vm63_vm0, %v121_v37, %v123_v38 }
  0x15   :  { %v59_v2 = vld.sshfl [vmem:[#allocation1] sm:$0xff pattern:$0x73625140]  ;;  %v60_v3 = vld.sshfl [vmem:[#allocation1 + $0x8] sm:$0xff pattern:$0x73625140] }
  0x16   :  { %v64_v4 = vsel %vm63_vm0, %v59_v2, 0.0  ;;  %v65_v5 = vsel %vm63_vm0, %v60_v3, 0.0  ;;  %71 = vst [vmem:[#allocation1] ss:$4 sm:$0xff] %v69_v1 }
  0x17   :  { %v66_v6 = vadd.f32 %v65_v5, %v64_v4 }
  0x19   :  { %67 = vadd.xlane.f32.xlu0 %v66_v6 }
  0x1d   :  { %v72_v7 = vld.sshfl [vmem:[#allocation1] sm:$0xff pattern:$0x73625140]  ;;  %v73_v8 = vld.sshfl [vmem:[#allocation1 + $0x8] sm:$0xff pattern:$0x73625140] }
  0x1e   :  { %v76_v9 = vsel %vm63_vm0, %v72_v7, 0.0  ;;  %v77_v10 = vsel %vm63_vm0, %v73_v8, 0.0 }
  0x1f   :  { %v78_v11 = vadd.f32 %v77_v10, %v76_v9 }
  0x21   :  { %79 = vadd.xlane.f32.xlu0 %v78_v11 }
  0x8c   :  { %v68_v12 = vpop.xlane.xlu0 %67 }
  0x8d   :  { %v81_v13 = vmul.f32 0.00390625, %v68_v12 }
  0x8f   :  { %v83_v15 = vmul.f32 %v81_v13, %v81_v13  ;;  %v101_v32 = vperm.slane %v81_v13, %v100_v26 }
  0x91   :  { %v103_v39 = vsub.f32 %v56_v0, %v101_v32 }
  0x94   :  { %v80_v14 = vpop.xlane.xlu0 %79 }
  0x95   :  { %v82_v16 = vmul.f32 0.00390625, %v80_v14 }
  0x97   :  { %v84_v17 = vsub.f32 %v82_v16, %v83_v15 }
  0x99   :  { %v85_v18 = vmax.f32 %v84_v17, 0.0 }
  0x9b   :  { %v86_v19 = vadd.f32 1e-05, %v85_v18 }
  0x9d   :  { %151 = vrsqrt.f32 %v86_v19  ;;  %vm93_vm2 = vweird.f32 %v86_v19 }
  0xa3   :  { %v152_v20 = vpop.eup %151 }
  0xa4   :  { %v88_v23 = vmul.f32 %v152_v20, %v86_v19  ;;  %vm94_vm1 = vweird.f32 %v152_v20 }
  0xa5   :  { %vm95_vm3 = vmor %vm93_vm2, %vm94_vm1 }
  0xa6   :  { %v89_v25 = vmul.f32 %v152_v20, %v88_v23 }
  0xa8   :  { %v90_v28 = vmul.f32 0.5, %v89_v25 }
  0xaa   :  { %v91_v30 = vsub.f32 1.5, %v90_v28 }
  0xac   :  { %v92_v33 = vmul.f32 %v152_v20, %v91_v30 }
  0xae   :  { %v96_v36 = vsel %vm95_vm3, %v152_v20, %v92_v33 }
  0xaf   :  { %v108_v40 = vperm.slane %v96_v36, %v100_v26 }
  0xb1   :  { %v110_v42 = vmul.f32 %v108_v40, %v103_v39 }
  0xb3   :  { %v118_v44 = vmul.f32 %v116_v41, %v110_v42 }
  0xb5   :  { %v126_v45 = vadd.f32 %v124_v43, %v118_v44 }
  0xb7   :  { %127 = vst [vmem:[#allocation8] sm:$0xf] %v126_v45 }
  0xb8   :  { %138 = dma.vmem_to_hbm [thread:$0]  %s134_s2, 64, %s136_s28, [#allocation4]  }
  0xb9   :  { %253 = dma.done.wait [#allocation4], 64  }
  0xba   :  { %254 = vsyncadd [#allocation4], 4294967232 }
  0xbb   :  { %143 = vsyncpa [#allocation3], 1 }
  0xbc   :  { %144 = vsyncpa [#allocation6], 1 }
  0xbd   :  { %145 = vsyncpa [#allocation4], 1 }

</bundles_post_ra>
